<compile_context>
chip_gen: v5e
topology: v5e:2x2
jax: 0.10.0
libtpu: 0.0.40
codegen_flags: <defaults>
</compile_context>

<pallas_src>
import math

import jax
import jax.numpy as jnp
import numpy as np
from jax.experimental import pallas as pl
from jax.experimental.pallas import tpu as pltpu


def _ceil_div(a, b):
    return -(-a // b)


def _round_up(a, m):
    return _ceil_div(a, m) * m


# ---------------------------------------------------------------------------
# Kernels
# ---------------------------------------------------------------------------

def _crf_fused_kernel(feats_ref, w_ref, tb_ref, out_ref):
    # feats_ref : (BR, k*H)    k original rows folded into the lane axis
    # w_ref     : (k*H, k*TT)  block-diagonal expanded weight (grid invariant)
    # tb_ref    : (1, k*TT)    transitions + bias, tiled k times (grid invariant)
    # out_ref   : (BR, k*TT)   lane-dense (multiple of 128) output tile
    out_ref[...] = (
        jnp.dot(feats_ref[...], w_ref[...], preferred_element_type=jnp.float32)
        + tb_ref[...]
    )


def _crf_two_stage_kernel(feats_ref, wt_ref, e_ref, tb_ref, out_ref):
    # feats_ref : (k*BR, H)     original rows
    # wt_ref    : (H, T)        weight^T (grid invariant)
    # e_ref     : (T, T*T)      0/1 selector, E[i, i*T + j] = 1 (grid invariant)
    # tb_ref    : (1, T*T)      transitions + bias (grid invariant)
    # out_ref   : (BR, k*T*T)   lane-dense folded output tile
    scores = jnp.dot(feats_ref[...], wt_ref[...],
                     preferred_element_type=jnp.float32)          # (k*BR, T)
    expanded = jnp.dot(scores, e_ref[...],
                       preferred_element_type=jnp.float32) + tb_ref[...]  # (k*BR, TT)
    # Fold k rows into the lane axis before the store (identity when k == 1).
    out_ref[...] = expanded.reshape(out_ref.shape)


# ---------------------------------------------------------------------------
# Wrapper
# ---------------------------------------------------------------------------

def crf_s_forward(feats, weight, bias, transitions, *,
                  target_rows_per_tile=1024,
                  vmem_budget_bytes=40 << 20):
    """feats: (B, S, H), weight: (T, H), bias: (T,), transitions: (T, T).
    Returns crf_scores: (B*S, T, T) float32 (same semantics as CRF_S.forward)."""
    B, S, H = feats.shape
    T = weight.shape[0]
    N = B * S
    TT = T * T

    # Lane-fold factor: k * TT = lcm(TT, 128) -> output rows are multiples of
    # 128 lanes, so stores are unmasked.
    k = 128 // math.gcd(TT, 128)
    LT = k * TT

    f32 = jnp.float32
    wt = jnp.transpose(weight).astype(f32)                                   # (H, T)
    trans_b = (transitions.astype(f32) + bias.astype(f32)[:, None]).reshape(1, TT)

    feats2d = feats.reshape(N, H).astype(f32)
    Nk = _round_up(N, k)
    if Nk != N:
        # TODO(synk): tiny (< k rows) pad re-copies feats; only hit when N % k != 0.
        feats2d = jnp.pad(feats2d, ((0, Nk - N), (0, 0)))
    rows = Nk // k                                    # rows of the folded output

    # ---- path selection (feedback item 2) -----------------------------------
    fused_w_bytes = (k * H) * LT * 4
    use_fused = (H <= 128) and (fused_w_bytes <= (4 << 20))

    if use_fused:
        # w_big[h, i*T + j] = weight[i, h]; block-diagonal replicate k times.
        w_big = jnp.repeat(wt, T, axis=1)                                     # (H, TT)
        if k == 1:
            w_fold, tb_fold, feats_op = w_big, trans_b, feats2d
        else:
            w_fold = jnp.kron(jnp.eye(k, dtype=f32), w_big)                   # (kH, kTT)
            tb_fold = jnp.tile(trans_b, (1, k))                               # (1, kTT)
            feats_op = feats2d.reshape(rows, k * H)                           # free reshape
        resident_bytes = fused_w_bytes + LT * 4
    else:
        # Two-stage: feats @ W^T, then expand T -> T*T with a 0/1 selector.
        e_sel = jnp.kron(jnp.eye(T, dtype=f32), jnp.ones((1, T), dtype=f32))  # (T, TT)
        feats_op = feats2d
        resident_bytes = H * T * 4 + T * TT * 4 + TT * 4

    # ---- tile sizing with an explicit VMEM budget (feedback items 3/4/8) ----
    # Count grid-invariant operands twice in case the single-buffer request is
    # not honored; streamed operands (feats tile + out tile) are double-buffered.
    resident_worst = 2 * resident_bytes
    per_folded_row_stream = 4 * (k * H + LT)          # feats bytes + out bytes per folded row
    avail = max(vmem_budget_bytes - resident_worst, per_folded_row_stream * 16)
    max_br = max(8, (avail // (2 * per_folded_row_stream)) // 8 * 8)
    br_target = max(8, (target_rows_per_tile // k) // 8 * 8)
    BR = min(max_br, br_target)

    if BR >= rows:
        BR = rows                                      # single full-extent block
        n_blocks = 1
    else:
        BR = max(8, (BR // 8) * 8)
        n_blocks = _ceil_div(rows, BR)
        # v7x megacore balance: prefer an even number of grid steps.
        if n_blocks > 1 and n_blocks % 2 == 1:
            alt = _round_up(_ceil_div(rows, n_blocks + 1), 8)
            if alt >= 8 and _ceil_div(rows, alt) % 2 == 0:
                BR = alt
                n_blocks = _ceil_div(rows, alt)

    per_step_stream = per_folded_row_stream * BR
    vmem_need = 2 * per_step_stream + resident_worst + (1 << 20)
    vmem_limit = int(min(max(vmem_need, 16 << 20), 100 << 20))

    if use_fused:
        flops = 2 * rows * (k * H) * LT
    else:
        flops = 2 * Nk * H * T + 2 * Nk * T * TT
    cost = pl.CostEstimate(
        flops=int(flops),
        transcendentals=0,
        bytes_accessed=int(4 * Nk * H + resident_bytes + 4 * rows * LT),
    )

    def _build(single_buffer_consts):
        const_kwargs = (
            dict(pipeline_mode=pl.Buffered(1)) if single_buffer_consts else {}
        )
        if use_fused:
            kernel = _crf_fused_kernel
            in_specs = [
                pl.BlockSpec((BR, k * H), lambda i: (i, 0)),
                pl.BlockSpec((k * H, LT), lambda i: (0, 0), **const_kwargs),
                pl.BlockSpec((1, LT), lambda i: (0, 0), **const_kwargs),
            ]
            operands = (feats_op, w_fold, tb_fold)
        else:
            kernel = _crf_two_stage_kernel
            in_specs = [
                pl.BlockSpec((BR * k, H), lambda i: (i, 0)),
                pl.BlockSpec((H, T), lambda i: (0, 0), **const_kwargs),
                pl.BlockSpec((T, TT), lambda i: (0, 0), **const_kwargs),
                pl.BlockSpec((1, TT), lambda i: (0, 0), **const_kwargs),
            ]
            operands = (feats_op, wt, e_sel, trans_b)

        call = pl.pallas_call(
            kernel,
            out_shape=jax.ShapeDtypeStruct((rows, LT), jnp.float32),
            grid_spec=pltpu.PrefetchScalarGridSpec(
                num_scalar_prefetch=0,
                grid=(n_blocks,),
                in_specs=in_specs,
                out_specs=pl.BlockSpec((BR, LT), lambda i: (i, 0)),
            ),
            compiler_params=pltpu.CompilerParams(
                dimension_semantics=("parallel",),
                vmem_limit_bytes=vmem_limit,
            ),
            cost_estimate=cost,
        )
        return call(*operands)

    try:
        out_flat = _build(True)
    except Exception:
        # Compatibility fallback: older JAX without BlockSpec pipeline_mode /
        # single-buffering support. Same math, default (double) buffering.
        out_flat = _build(False)

    # Un-fold the lanes: (rows, k*TT) -> (Nk, T, T) is a free row-major reshape.
    out = out_flat.reshape(Nk, T, T)
    if Nk != N:
        out = out[:N]
    return out


if __name__ == "__main__":
    # Small shapes consistent with the module's forward: feats (B, S, H).
    B, S, H, T = 2, 8, 32, 8

    key = jax.random.PRNGKey(0)
    k_feats, k_w, k_b, k_tr = jax.random.split(key, 4)

    feats = jax.random.normal(k_feats, (B, S, H), dtype=jnp.float32)
    weight = jax.random.normal(k_w, (T, H), dtype=jnp.float32) * 0.1   # nn.Linear(H, T).weight
    bias = jax.random.normal(k_b, (T,), dtype=jnp.float32) * 0.1       # nn.Linear(H, T).bias
    transitions = jax.random.normal(k_tr, (T, T), dtype=jnp.float32) * 0.1

    out = crf_s_forward(feats, weight, bias, transitions)
    out = jax.block_until_ready(out)

    # Host-side float64 reference (matches PyTorch CRF_S.forward semantics).
    feats_np = np.asarray(feats, dtype=np.float64).reshape(B * S, H)
    scores_ref = feats_np @ np.asarray(weight, dtype=np.float64).T + np.asarray(bias, dtype=np.float64)
    ref = scores_ref[:, :, None] + np.asarray(transitions, dtype=np.float64)[None, :, :]

    assert out.shape == (B * S, T, T), out.shape
    err = float(np.max(np.abs(np.asarray(out, dtype=np.float64) - ref)))
    # Tolerance allows for possible multi-pass bf16 MXU routes on f32 inputs;
    # layout/semantics bugs would show up as O(0.1-1) errors.
    assert err < 2e-2, err

    print("KERNEL_OK")
</pallas_src>

<mosaic_0001>
module attributes {stable_mosaic.version = 11 : i64} {
  func.func @_crf_fused_kernel(%arg0: i32, %arg1: memref<8x64xf32, #tpu.memory_space<vmem>>, %arg2: memref<64x128xf32, #tpu.memory_space<vmem>>, %arg3: memref<1x128xf32, #tpu.memory_space<vmem>>, %arg4: memref<8x128xf32, #tpu.memory_space<vmem>>) attributes {dimension_semantics = [#tpu.dimension_semantics<parallel>], iteration_bounds = array<i64: 1>, scalar_prefetch = 0 : i64, scratch_operands = 0 : i64, tpu.core_type = #tpu.core_type<tc>, window_params = [{transform_indices = @transform_0, window_bounds = array<i64: 8, 64>}, {pipeline_mode = #tpu.pipeline_mode<synchronous>, transform_indices = @transform_1, window_bounds = array<i64: 64, 128>}, {pipeline_mode = #tpu.pipeline_mode<synchronous>, transform_indices = @transform_2, window_bounds = array<i64: 1, 128>}, {transform_indices = @transform_3, window_bounds = array<i64: 8, 128>}]} {
    %c0 = arith.constant 0 : index
    %c0_0 = arith.constant 0 : index
    %0 = vector.load %arg1[%c0, %c0_0] : memref<8x64xf32, #tpu.memory_space<vmem>>, vector<8x64xf32>
    %c0_1 = arith.constant 0 : index
    %c0_2 = arith.constant 0 : index
    %1 = vector.load %arg2[%c0_1, %c0_2] : memref<64x128xf32, #tpu.memory_space<vmem>>, vector<64x128xf32>
    %cst = arith.constant dense<0.000000e+00> : vector<8x128xf32>
    %2 = tpu.matmul %0, %1, %cst {dimension_numbers = #tpu.dot_dimension_numbers<[1], [0], [0], [1], [0, 0, 1, 1], [], []>} : vector<8x64xf32>, vector<64x128xf32>, vector<8x128xf32> -> vector<8x128xf32>
    %c0_3 = arith.constant 0 : index
    %c0_4 = arith.constant 0 : index
    %3 = vector.load %arg3[%c0_3, %c0_4] : memref<1x128xf32, #tpu.memory_space<vmem>>, vector<1x128xf32>
    %4 = vector.broadcast %3 : vector<1x128xf32> to vector<8x128xf32>
    %5 = arith.addf %2, %4 : vector<8x128xf32>
    %c0_5 = arith.constant 0 : index
    %c0_6 = arith.constant 0 : index
    %6 = vector.load %arg4[%c0_5, %c0_6] : memref<8x128xf32, #tpu.memory_space<vmem>>, vector<8x128xf32>
    tpu.vector_store %arg4[%c0_5, %c0_6], %5 {strides = array<i32>} : memref<8x128xf32, #tpu.memory_space<vmem>>, vector<8x128xf32>,
    return
  }
  func.func @transform_0(%arg0: i32) -> (i32, i32) {
    %c0_i32 = arith.constant 0 : i32
    %c0_i32_0 = arith.constant 0 : i32
    return %arg0, %c0_i32 : i32, i32
  }
  func.func @transform_1(%arg0: i32) -> (i32, i32) {
    %c0_i32 = arith.constant 0 : i32
    %c0_i32_0 = arith.constant 0 : i32
    %c0_i32_1 = arith.constant 0 : i32
    return %c0_i32, %c0_i32_0 : i32, i32
  }
  func.func @transform_2(%arg0: i32) -> (i32, i32) {
    %c0_i32 = arith.constant 0 : i32
    %c0_i32_0 = arith.constant 0 : i32
    %c0_i32_1 = arith.constant 0 : i32
    return %c0_i32, %c0_i32_0 : i32, i32
  }
  func.func @transform_3(%arg0: i32) -> (i32, i32) {
    %c0_i32 = arith.constant 0 : i32
    %c0_i32_0 = arith.constant 0 : i32
    return %arg0, %c0_i32 : i32, i32
  }
}

module attributes {stable_mosaic.version = 11 : i64} {
  func.func @_crf_fused_kernel(%arg0: i32, %arg1: memref<8x64xf32, #tpu.memory_space<vmem>>, %arg2: memref<64x128xf32, #tpu.memory_space<vmem>>, %arg3: memref<1x128xf32, #tpu.memory_space<vmem>>, %arg4: memref<8x128xf32, #tpu.memory_space<vmem>>) attributes {dimension_semantics = [#tpu.dimension_semantics<parallel>], iteration_bounds = array<i64: 1>, scalar_prefetch = 0 : i64, scratch_operands = 0 : i64, tpu.core_type = #tpu.core_type<tc>, window_params = [{transform_indices = @transform_0, window_bounds = array<i64: 8, 64>}, {pipeline_mode = #tpu.pipeline_mode<synchronous>, transform_indices = @transform_1, window_bounds = array<i64: 64, 128>}, {pipeline_mode = #tpu.pipeline_mode<synchronous>, transform_indices = @transform_2, window_bounds = array<i64: 1, 128>}, {transform_indices = @transform_3, window_bounds = array<i64: 8, 128>}]} {
    %c0 = arith.constant 0 : index
    %c0_0 = arith.constant 0 : index
    %0 = vector.load %arg1[%c0, %c0_0] : memref<8x64xf32, #tpu.memory_space<vmem>>, vector<8x64xf32>
    %c0_1 = arith.constant 0 : index
    %c0_2 = arith.constant 0 : index
    %1 = vector.load %arg2[%c0_1, %c0_2] : memref<64x128xf32, #tpu.memory_space<vmem>>, vector<64x128xf32>
    %cst = arith.constant dense<0.000000e+00> : vector<8x128xf32>
    %2 = tpu.matmul %0, %1, %cst {dimension_numbers = #tpu.dot_dimension_numbers<[1], [0], [0], [1], [0, 0, 1, 1], [], []>} : vector<8x64xf32>, vector<64x128xf32>, vector<8x128xf32> -> vector<8x128xf32>
    %c0_3 = arith.constant 0 : index
    %c0_4 = arith.constant 0 : index
    %3 = vector.load %arg3[%c0_3, %c0_4] : memref<1x128xf32, #tpu.memory_space<vmem>>, vector<1x128xf32>
    %4 = vector.broadcast %3 : vector<1x128xf32> to vector<8x128xf32>
    %5 = arith.addf %2, %4 : vector<8x128xf32>
    %c0_5 = arith.constant 0 : index
    %c0_6 = arith.constant 0 : index
    %6 = vector.load %arg4[%c0_5, %c0_6] : memref<8x128xf32, #tpu.memory_space<vmem>>, vector<8x128xf32>
    tpu.vector_store %arg4[%c0_5, %c0_6], %5 {strides = array<i32>} : memref<8x128xf32, #tpu.memory_space<vmem>>, vector<8x128xf32>,
    return
  }
  func.func @transform_0(%arg0: i32) -> (i32, i32) {
    %c0_i32 = arith.constant 0 : i32
    %c0_i32_0 = arith.constant 0 : i32
    return %arg0, %c0_i32 : i32, i32
  }
  func.func @transform_1(%arg0: i32) -> (i32, i32) {
    %c0_i32 = arith.constant 0 : i32
    %c0_i32_0 = arith.constant 0 : i32
    %c0_i32_1 = arith.constant 0 : i32
    return %c0_i32, %c0_i32_0 : i32, i32
  }
  func.func @transform_2(%arg0: i32) -> (i32, i32) {
    %c0_i32 = arith.constant 0 : i32
    %c0_i32_0 = arith.constant 0 : i32
    %c0_i32_1 = arith.constant 0 : i32
    return %c0_i32, %c0_i32_0 : i32, i32
  }
  func.func @transform_3(%arg0: i32) -> (i32, i32) {
    %c0_i32 = arith.constant 0 : i32
    %c0_i32_0 = arith.constant 0 : i32
    return %arg0, %c0_i32 : i32, i32
  }
}

</mosaic_0001>

<bundles_post_ra>
// kernel: tpu_custom_call.1
= control target key start
LH: loop header
LB: loop body
LE: loop exit
PB: predicated region body
PF: predicated region fallthrough
CT: control target
= control target key end

     0   :  { %8 = vsyncpa [#allocation3], 0  ;;  %s223_s0 = inlined_call_operand.hbm [shape: f32[8,64], index: 0, kind: input, shape index: {}]   ;;  %s224_s1 = inlined_call_operand.hbm [shape: f32[64,128], index: 1, kind: input, shape index: {}]   ;;  %s225_s2 = inlined_call_operand.vmem [shape: f32[1,128], index: 2, kind: input, shape index: {}]   ;;  %s226_s3 = inlined_call_operand.hbm [shape: f32[8,128], index: 3, kind: output, shape index: {}]  }
   0x1   :  { %9 = vsyncpa [#allocation6], 0 }
   0x2   :  { %10 = vsyncpa [#allocation4], 0  ;;  %s16_s14 = sshll.u32 %s223_s0, 4  ;;  %s186_s15 = smov [#allocation2]   ;;  %s17_s14 = int_to_ptr.hbm [resolvable:$true] %s16_s14 }
   0x3   :  { %s18_s16 = sshll.u32 %s186_s15, 4  ;;  %s26_s19 = sshll.u32 %s224_s1, 4  ;;  %s19_s16 = int_to_ptr.vmem [resolvable:$true] %s18_s16  ;;  %s27_s19 = int_to_ptr.hbm [resolvable:$true] %s26_s19 }
   0x4   :  { %21 = dma.hbm_to_vmem [thread:$0]  %s17_s14, 128, %s19_s16, [#allocation3]  }
   0x5   :  { %s187_s20 = smov [#allocation5]   ;;  %s188_s22 = smov 128  }
   0x6   :  { %s28_s21 = sshll.u32 %s187_s20, 4  ;;  %s189_s23 = smov 8   ;;  %s29_s21 = int_to_ptr.vmem [resolvable:$true] %s28_s21 }
   0x7   :  { %34 = dma.hbm_to_vmem [thread:$0]  %s27_s19, 1024, %s29_s21, [#allocation6], %s188_s22, %s188_s22, %s189_s23  }
   0x8   :  { %180 = dma.done.wait [#allocation3], 128  }
   0x9   :  { %181 = vsyncadd [#allocation3], 4294967168 }
   0xa   :  { %182 = dma.done.wait [#allocation6], 1024  }
   0xb   :  { %183 = vsyncadd [#allocation6], 4294966272  ;;  %v53_v0 = vld [vmem:[#allocation5 + $0x38] sm:$0xff]  ;;  %v52_v1 = vld [vmem:[#allocation5 + $0x30] sm:$0xff]  ;;  %vm58_vm0 = vcmask 523264   ;;  %s190_s24 = smov [#allocation7]  }
   0xc   :  { %70 = vmatpush.msra.mxu0 %v53_v0  ;;  %v51_v2 = vld [vmem:[#allocation5 + $0x28] sm:$0xff]  ;;  %v50_v3 = vld [vmem:[#allocation5 + $0x20] sm:$0xff]  ;;  %v49_v4 = vld [vmem:[#allocation5 + $0x18] sm:$0xff]  ;;  %s88_s25 = sshll.u32 %s190_s24, 4  ;;  %s90_s28 = sshll.u32 %s226_s3, 4  ;;  %s89_s25 = int_to_ptr.vmem [resolvable:$true] %s88_s25  ;;  %s91_s28 = int_to_ptr.hbm [resolvable:$true] %s90_s28 }
   0xd   :  { %v48_v5 = vld [vmem:[#allocation5 + $0x10] sm:$0xff]  ;;  %v47_v6 = vld [vmem:[#allocation5 + $0x8] sm:$0xff]  ;;  %v46_v7 = vld [vmem:[#allocation5] sm:$0xff] }
   0xe   :  { %71 = vmatpush.msra.mxu0 %v52_v1  ;;  %v45_v8 = vld [vmem:[#allocation2] sm:$0xff] }
   0xf   :  { %v107_v9 = vld [vmem:[%s225_s2] ss:$0 sm:$0xff] }
  0x10   :  { %72 = vmatpush.msra.mxu0 %v51_v2 }
  0x12   :  { %73 = vmatpush.msra.mxu0 %v50_v3 }
  0x14   :  { %74 = vmatpush.msra.mxu0 %v49_v4 }
  0x16   :  { %75 = vmatpush.msra.mxu0 %v48_v5 }
  0x18   :  { %76 = vmatpush.msra.mxu0 %v47_v6 }
  0x1a   :  { %77 = vmatpush.msra.mxu0 %v46_v7 }
  0x1b   :  { %101 = vmatmul.msk.f32.vlgmr.msra.gmra.mxu0 %vm58_vm0, %v45_v8 }
  0x98   :  { %v79_v10 = vpop.f32.mrf.mxu0 }
  0x99   :  { %v80_v11 = vadd.f32 %v107_v9, %v79_v10 }
  0x9b   :  { %82 = vst [vmem:[#allocation7] sm:$0xff] %v80_v11 }
  0x9c   :  { %93 = dma.vmem_to_hbm [thread:$0]  %s89_s25, 128, %s91_s28, [#allocation4]  }
  0x9d   :  { %184 = dma.done.wait [#allocation4], 128  }
  0x9e   :  { %185 = vsyncadd [#allocation4], 4294967168 }
  0x9f   :  { %98 = vsyncpa [#allocation3], 1 }
  0xa0   :  { %99 = vsyncpa [#allocation6], 1 }
  0xa1   :  { %100 = vsyncpa [#allocation4], 1 }

// kernel: tpu_custom_call.1
= control target key start
LH: loop header
LB: loop body
LE: loop exit
PB: predicated region body
PF: predicated region fallthrough
CT: control target
= control target key end

     0   :  { %8 = vsyncpa [#allocation3], 0  ;;  %s223_s0 = inlined_call_operand.hbm [shape: f32[8,64], index: 0, kind: input, shape index: {}]   ;;  %s224_s1 = inlined_call_operand.hbm [shape: f32[64,128], index: 1, kind: input, shape index: {}]   ;;  %s225_s2 = inlined_call_operand.vmem [shape: f32[1,128], index: 2, kind: input, shape index: {}]   ;;  %s226_s3 = inlined_call_operand.hbm [shape: f32[8,128], index: 3, kind: output, shape index: {}]  }
   0x1   :  { %9 = vsyncpa [#allocation6], 0 }
   0x2   :  { %10 = vsyncpa [#allocation4], 0  ;;  %s16_s14 = sshll.u32 %s223_s0, 4  ;;  %s186_s15 = smov [#allocation2]   ;;  %s17_s14 = int_to_ptr.hbm [resolvable:$true] %s16_s14 }
   0x3   :  { %s18_s16 = sshll.u32 %s186_s15, 4  ;;  %s26_s19 = sshll.u32 %s224_s1, 4  ;;  %s19_s16 = int_to_ptr.vmem [resolvable:$true] %s18_s16  ;;  %s27_s19 = int_to_ptr.hbm [resolvable:$true] %s26_s19 }
   0x4   :  { %21 = dma.hbm_to_vmem [thread:$0]  %s17_s14, 128, %s19_s16, [#allocation3]  }
   0x5   :  { %s187_s20 = smov [#allocation5]   ;;  %s188_s22 = smov 128  }
   0x6   :  { %s28_s21 = sshll.u32 %s187_s20, 4  ;;  %s189_s23 = smov 8   ;;  %s29_s21 = int_to_ptr.vmem [resolvable:$true] %s28_s21 }
   0x7   :  { %34 = dma.hbm_to_vmem [thread:$0]  %s27_s19, 1024, %s29_s21, [#allocation6], %s188_s22, %s188_s22, %s189_s23  }
   0x8   :  { %180 = dma.done.wait [#allocation3], 128  }
   0x9   :  { %181 = vsyncadd [#allocation3], 4294967168 }
   0xa   :  { %182 = dma.done.wait [#allocation6], 1024  }
   0xb   :  { %183 = vsyncadd [#allocation6], 4294966272  ;;  %v53_v0 = vld [vmem:[#allocation5 + $0x38] sm:$0xff]  ;;  %v52_v1 = vld [vmem:[#allocation5 + $0x30] sm:$0xff]  ;;  %vm58_vm0 = vcmask 523264   ;;  %s190_s24 = smov [#allocation7]  }
   0xc   :  { %70 = vmatpush.msra.mxu0 %v53_v0  ;;  %v51_v2 = vld [vmem:[#allocation5 + $0x28] sm:$0xff]  ;;  %v50_v3 = vld [vmem:[#allocation5 + $0x20] sm:$0xff]  ;;  %v49_v4 = vld [vmem:[#allocation5 + $0x18] sm:$0xff]  ;;  %s88_s25 = sshll.u32 %s190_s24, 4  ;;  %s90_s28 = sshll.u32 %s226_s3, 4  ;;  %s89_s25 = int_to_ptr.vmem [resolvable:$true] %s88_s25  ;;  %s91_s28 = int_to_ptr.hbm [resolvable:$true] %s90_s28 }
   0xd   :  { %v48_v5 = vld [vmem:[#allocation5 + $0x10] sm:$0xff]  ;;  %v47_v6 = vld [vmem:[#allocation5 + $0x8] sm:$0xff]  ;;  %v46_v7 = vld [vmem:[#allocation5] sm:$0xff] }
   0xe   :  { %71 = vmatpush.msra.mxu0 %v52_v1  ;;  %v45_v8 = vld [vmem:[#allocation2] sm:$0xff] }
   0xf   :  { %v107_v9 = vld [vmem:[%s225_s2] ss:$0 sm:$0xff] }
  0x10   :  { %72 = vmatpush.msra.mxu0 %v51_v2 }
  0x12   :  { %73 = vmatpush.msra.mxu0 %v50_v3 }
  0x14   :  { %74 = vmatpush.msra.mxu0 %v49_v4 }
  0x16   :  { %75 = vmatpush.msra.mxu0 %v48_v5 }
  0x18   :  { %76 = vmatpush.msra.mxu0 %v47_v6 }
  0x1a   :  { %77 = vmatpush.msra.mxu0 %v46_v7 }
  0x1b   :  { %101 = vmatmul.msk.f32.vlgmr.msra.gmra.mxu0 %vm58_vm0, %v45_v8 }
  0x98   :  { %v79_v10 = vpop.f32.mrf.mxu0 }
  0x99   :  { %v80_v11 = vadd.f32 %v107_v9, %v79_v10 }
  0x9b   :  { %82 = vst [vmem:[#allocation7] sm:$0xff] %v80_v11 }
  0x9c   :  { %93 = dma.vmem_to_hbm [thread:$0]  %s89_s25, 128, %s91_s28, [#allocation4]  }
  0x9d   :  { %184 = dma.done.wait [#allocation4], 128  }
  0x9e   :  { %185 = vsyncadd [#allocation4], 4294967168 }
  0x9f   :  { %98 = vsyncpa [#allocation3], 1 }
  0xa0   :  { %99 = vsyncpa [#allocation6], 1 }
  0xa1   :  { %100 = vsyncpa [#allocation4], 1 }

</bundles_post_ra>
